<compile_context>
chip_gen: v5e
topology: v5e:2x2
jax: 0.10.0
libtpu: 0.0.40
codegen_flags: <defaults>
</compile_context>

<pallas_src>
import functools

import numpy as np
import jax
import jax.numpy as jnp
from jax.experimental import pallas as pl
from jax.experimental.pallas import tpu as pltpu


def _round_up(x, m):
    return ((x + m - 1) // m) * m


def _decoder_kernel(*refs, has_context):
    """One (1, :, tn) spatial column-tile of the 1x1 conv, written directly as
    two row-aligned heads (logits, context)."""
    if has_context:
        (feat_ref, ctx_ref, wlf_ref, wlc_ref, wcf_ref, wcc_ref,
         bl_ref, bc_ref, logits_ref, octx_ref) = refs
    else:
        (feat_ref, wlf_ref, wcf_ref, bl_ref, bc_ref,
         logits_ref, octx_ref) = refs
        ctx_ref = wlc_ref = wcc_ref = None

    x_f = feat_ref[0]  # (C_feat, tn)

    # Two row-aligned matmuls -> no sublane-misaligned accumulator split.
    logits = jnp.dot(wlf_ref[...], x_f, preferred_element_type=jnp.float32)
    octx = jnp.dot(wcf_ref[...], x_f, preferred_element_type=jnp.float32)
    if has_context:
        x_c = ctx_ref[0]  # (C_ctx, tn)
        logits = logits + jnp.dot(wlc_ref[...], x_c,
                                  preferred_element_type=jnp.float32)
        octx = octx + jnp.dot(wcc_ref[...], x_c,
                              preferred_element_type=jnp.float32)

    # Bias epilogue stays f32 (v5e has no bf16 VPU); cast only on store.
    logits_ref[0] = (logits + bl_ref[...]).astype(logits_ref.dtype)
    octx_ref[0] = (octx + bc_ref[...]).astype(octx_ref.dtype)


def _conv1x1_split(feat, ctx, w_l_feat, w_l_ctx, w_c_feat, w_c_ctx, b_l, b_c,
                   *, logits_dtype, context_dtype, tile_n, vmem_budget_bytes):
    """Fused (concat -> 1x1 conv -> channel split) in channels-first layout.

    feat:     (N, C_feat, M)              activations, native dtype
    ctx:      (N, C_ctx,  M) or None
    w_l_feat: (P, C_feat)      w_l_ctx: (P, C_ctx)      (logits head rows)
    w_c_feat: (Cc, C_feat)     w_c_ctx: (Cc, C_ctx)     (context head rows)
    b_l:      (P, 1) f32       b_c:     (Cc, 1) f32
    Returns (logits (N, P, M), context (N, Cc, M)).
    """
    N, C_feat, M = feat.shape
    P = w_l_feat.shape[0]
    Cc = w_c_feat.shape[0]
    has_ctx = ctx is not None
    C_ctx = ctx.shape[1] if has_ctx else 0

    in_item = feat.dtype.itemsize
    ctx_item = ctx.dtype.itemsize if has_ctx else 0
    l_item = np.dtype(logits_dtype).itemsize
    c_item = np.dtype(context_dtype).itemsize

    def act_bytes(t):
        # double-buffered activation inputs + outputs per grid step
        return 2 * t * (C_feat * in_item + C_ctx * ctx_item
                        + P * l_item + Cc * c_item)

    # Lane-dense spatial tile (multiple of 128), shrunk to fit the VMEM budget.
    tn = _round_up(min(tile_n, _round_up(M, 128)), 128)
    while tn > 128 and act_bytes(tn) > vmem_budget_bytes:
        tn = _round_up(tn // 2, 128)

    # No wrapper-side padding: Pallas masks the ragged edge tile.
    grid = (N, pl.cdiv(M, tn))

    def xmap(n, j):
        return (n, 0, j)

    def wmap(n, j):
        return (0, 0)

    in_specs = [pl.BlockSpec((1, C_feat, tn), xmap)]
    inputs = [feat]
    if has_ctx:
        in_specs.append(pl.BlockSpec((1, C_ctx, tn), xmap))
        inputs.append(ctx)
    in_specs.append(pl.BlockSpec((P, C_feat), wmap))
    inputs.append(w_l_feat)
    if has_ctx:
        in_specs.append(pl.BlockSpec((P, C_ctx), wmap))
        inputs.append(w_l_ctx)
    in_specs.append(pl.BlockSpec((Cc, C_feat), wmap))
    inputs.append(w_c_feat)
    if has_ctx:
        in_specs.append(pl.BlockSpec((Cc, C_ctx), wmap))
        inputs.append(w_c_ctx)
    in_specs.append(pl.BlockSpec((P, 1), wmap))
    inputs.append(b_l)
    in_specs.append(pl.BlockSpec((Cc, 1), wmap))
    inputs.append(b_c)

    out_shape = (
        jax.ShapeDtypeStruct((N, P, M), logits_dtype),
        jax.ShapeDtypeStruct((N, Cc, M), context_dtype),
    )
    out_specs = (
        pl.BlockSpec((1, P, tn), xmap),
        pl.BlockSpec((1, Cc, tn), xmap),
    )

    # Explicit VMEM limit: activation buffers + (double-buffered) weights + headroom.
    w_bytes = 2 * ((P + Cc) * (C_feat * in_item + C_ctx * max(ctx_item, in_item))
                   + (P + Cc) * 4)
    vmem_limit = int(min(64 << 20,
                         max(32 << 20, act_bytes(tn) + w_bytes + (4 << 20))))

    kernel = functools.partial(_decoder_kernel, has_context=has_ctx)

    return pl.pallas_call(
        kernel,
        out_shape=out_shape,
        grid_spec=pltpu.PrefetchScalarGridSpec(
            num_scalar_prefetch=0,
            grid=grid,
            in_specs=in_specs,
            out_specs=out_specs,
        ),
        compiler_params=pltpu.CompilerParams(
            dimension_semantics=("parallel", "parallel"),
            vmem_limit_bytes=vmem_limit),
    )(*inputs)


class DecoderPallas:
    """JAX/Pallas port of the PyTorch Decoder module.

    `layers` maps scale -> (weight, bias) of a 1x1 conv; weight shape
    (C_out, C_in) (Conv2d 1x1 with kernel dims squeezed), bias (C_out,).

    logits_dtype / context_dtype: optional store dtypes (default: the
    features' dtype).  Setting context_dtype=jnp.bfloat16 roughly halves the
    dominant output-store traffic on v6e/v7x.
    Activations are never cast in the wrapper; feed bf16 upstream if you want
    a bf16 MXU path (weights are cast to match the activations, cheaply).
    """

    def __init__(self, layers, super_resolution=False, num_prototypes=1,
                 logits_dtype=None, context_dtype=None,
                 tile_n=1024, vmem_budget_bytes=32 << 20):
        self.super_resolution = super_resolution
        self.num_prototypes = num_prototypes
        self.logits_dtype = logits_dtype
        self.context_dtype = context_dtype
        self.tile_n = tile_n
        self.vmem_budget_bytes = vmem_budget_bytes
        self.layers = {}
        P = num_prototypes
        for scale, (w, b) in layers.items():
            w = jnp.asarray(w)
            b = jnp.asarray(b).astype(jnp.float32)
            C_out = w.shape[0]
            if not (0 < P < C_out):
                # TODO(synk): degenerate split (num_prototypes == 0 or == C_out) not implemented.
                raise NotImplementedError("requires 0 < num_prototypes < C_out")
            # Row-split the head once here: kernel writes each head directly,
            # no sublane-misaligned accumulator slicing per tile.
            self.layers[scale] = (w[:P], w[P:],
                                  b[:P].reshape(-1, 1), b[P:].reshape(-1, 1))
        self.scales = self.layers.keys()

    def __call__(self, features, context=None, scale=None):
        w_l, w_c, b_l, b_c = self.layers[scale]
        N, C_feat, H, W = features.shape
        M = H * W
        act_dtype = features.dtype
        logits_dtype = act_dtype if self.logits_dtype is None else self.logits_dtype
        context_dtype = act_dtype if self.context_dtype is None else self.context_dtype

        # NCHW -> (N, C, H*W): free reshape, no transpose, no activation cast.
        feat = features.reshape(N, C_feat, M)
        # Cast the tiny weights to the activations' dtype (not the reverse).
        w_l = w_l.astype(act_dtype)
        w_c = w_c.astype(act_dtype)

        if context is not None:
            C_ctx = context.shape[1]
            ctx = context.reshape(N, C_ctx, M)
            w_l_feat = w_l[:, :C_feat]
            w_c_feat = w_c[:, :C_feat]
            w_l_ctx = w_l[:, C_feat:].astype(ctx.dtype)
            w_c_ctx = w_c[:, C_feat:].astype(ctx.dtype)
        else:
            ctx = None
            w_l_feat, w_c_feat = w_l, w_c
            w_l_ctx = w_c_ctx = None

        logits, ctx_out = _conv1x1_split(
            feat, ctx, w_l_feat, w_l_ctx, w_c_feat, w_c_ctx, b_l, b_c,
            logits_dtype=logits_dtype, context_dtype=context_dtype,
            tile_n=self.tile_n, vmem_budget_bytes=self.vmem_budget_bytes)

        P = w_l.shape[0]
        return (logits.reshape(N, P, H, W),
                ctx_out.reshape(N, w_c.shape[0], H, W))


def _reference(features, context, w_oc_ic, bias, num_prototypes):
    if context is not None:
        x = jnp.concatenate((features, context), axis=1)
    else:
        x = features
    y = jnp.einsum("nchw,oc->nohw", x, w_oc_ic) + bias[None, :, None, None]
    return y[:, :num_prototypes], y[:, num_prototypes:]


if __name__ == "__main__":
    key = jax.random.PRNGKey(0)
    kf, kc, kw, kb = jax.random.split(key, 4)

    # Small shapes consistent with the module's forward.
    N, C_feat, C_ctx, H, W = 2, 4, 4, 16, 16
    C_in = C_feat + C_ctx
    C_out = 32
    P = 1

    features = jax.random.normal(kf, (N, C_feat, H, W), dtype=jnp.float32)
    context = jax.random.normal(kc, (N, C_ctx, H, W), dtype=jnp.float32)
    w = jax.random.normal(kw, (C_out, C_in), dtype=jnp.float32) * 0.1
    b = jax.random.normal(kb, (C_out,), dtype=jnp.float32) * 0.1

    ref_logits, ref_ctx = _reference(features, context, w, b, P)

    # --- f32, with context (fused concat + fused row-split) -----------------
    dec = DecoderPallas({"8": (w, b)}, num_prototypes=P)
    logits, ctx_out = dec(features, context=context, scale="8")
    jax.block_until_ready((logits, ctx_out))
    assert logits.shape == (N, P, H, W)
    assert ctx_out.shape == (N, C_out - P, H, W)
    assert jnp.allclose(logits, ref_logits, atol=1e-5, rtol=1e-5)
    assert jnp.allclose(ctx_out, ref_ctx, atol=1e-5, rtol=1e-5)

    # --- f32, context=None ---------------------------------------------------
    w_nc = w[:, :C_feat]
    dec_nc = DecoderPallas({"8": (w_nc, b)}, num_prototypes=P)
    l2, c2 = dec_nc(features, context=None, scale="8")
    jax.block_until_ready((l2, c2))
    r_l2, r_c2 = _reference(features, None, w_nc, b, P)
    assert jnp.allclose(l2, r_l2, atol=1e-5, rtol=1e-5)
    assert jnp.allclose(c2, r_c2, atol=1e-5, rtol=1e-5)

    # --- ragged spatial edge: M not a multiple of the tile (no jnp.pad) ------
    H2, W2 = 16, 24  # M = 384, tile_n = 256 -> last tile masked (128 valid)
    kf2, kc2 = jax.random.split(jax.random.PRNGKey(1))
    f_rag = jax.random.normal(kf2, (N, C_feat, H2, W2), dtype=jnp.float32)
    c_rag = jax.random.normal(kc2, (N, C_ctx, H2, W2), dtype=jnp.float32)
    dec_rag = DecoderPallas({"8": (w, b)}, num_prototypes=P, tile_n=256)
    l3, c3 = dec_rag(f_rag, context=c_rag, scale="8")
    jax.block_until_ready((l3, c3))
    r_l3, r_c3 = _reference(f_rag, c_rag, w, b, P)
    assert jnp.allclose(l3, r_l3, atol=1e-5, rtol=1e-5)
    assert jnp.allclose(c3, r_c3, atol=1e-5, rtol=1e-5)

    # --- native bf16 activations (no wrapper-side cast pass) -----------------
    f_bf = features.astype(jnp.bfloat16)
    c_bf = context.astype(jnp.bfloat16)
    dec_bf = DecoderPallas({"8": (w, b)}, num_prototypes=P)
    l4, c4 = dec_bf(f_bf, context=c_bf, scale="8")
    jax.block_until_ready((l4, c4))
    assert l4.dtype == jnp.bfloat16 and c4.dtype == jnp.bfloat16
    assert jnp.allclose(l4.astype(jnp.float32), ref_logits, atol=5e-2, rtol=5e-2)
    assert jnp.allclose(c4.astype(jnp.float32), ref_ctx, atol=5e-2, rtol=5e-2)

    # --- bf16 context-output store (output-traffic opt on v6e/v7x) -----------
    dec_bo = DecoderPallas({"8": (w, b)}, num_prototypes=P,
                           context_dtype=jnp.bfloat16)
    l5, c5 = dec_bo(features, context=context, scale="8")
    jax.block_until_ready((l5, c5))
    assert l5.dtype == jnp.float32 and c5.dtype == jnp.bfloat16
    assert jnp.allclose(l5, ref_logits, atol=1e-5, rtol=1e-5)
    assert jnp.allclose(c5.astype(jnp.float32), ref_ctx, atol=5e-2, rtol=5e-2)

    print("KERNEL_OK")
</pallas_src>

<mosaic_0001>
module attributes {stable_mosaic.version = 11 : i64} {
  func.func @_decoder_kernel(%arg0: i32, %arg1: i32, %arg2: memref<1x4x256xf32, #tpu.memory_space<vmem>>, %arg3: memref<1x4x256xf32, #tpu.memory_space<vmem>>, %arg4: memref<1x4xf32, #tpu.memory_space<vmem>>, %arg5: memref<1x4xf32, #tpu.memory_space<vmem>>, %arg6: memref<31x4xf32, #tpu.memory_space<vmem>>, %arg7: memref<31x4xf32, #tpu.memory_space<vmem>>, %arg8: memref<1x1xf32, #tpu.memory_space<vmem>>, %arg9: memref<31x1xf32, #tpu.memory_space<vmem>>, %arg10: memref<1x1x256xf32, #tpu.memory_space<vmem>>, %arg11: memref<1x31x256xf32, #tpu.memory_space<vmem>>) attributes {dimension_semantics = [#tpu.dimension_semantics<parallel>, #tpu.dimension_semantics<parallel>], iteration_bounds = array<i64: 2, 1>, scalar_prefetch = 0 : i64, scratch_operands = 0 : i64, tpu.core_type = #tpu.core_type<tc>, window_params = [{transform_indices = @transform_0, window_bounds = array<i64: 1, 4, 256>}, {transform_indices = @transform_1, window_bounds = array<i64: 1, 4, 256>}, {pipeline_mode = #tpu.pipeline_mode<synchronous>, transform_indices = @transform_2, window_bounds = array<i64: 1, 4>}, {pipeline_mode = #tpu.pipeline_mode<synchronous>, transform_indices = @transform_3, window_bounds = array<i64: 1, 4>}, {pipeline_mode = #tpu.pipeline_mode<synchronous>, transform_indices = @transform_4, window_bounds = array<i64: 31, 4>}, {pipeline_mode = #tpu.pipeline_mode<synchronous>, transform_indices = @transform_5, window_bounds = array<i64: 31, 4>}, {pipeline_mode = #tpu.pipeline_mode<synchronous>, transform_indices = @transform_6, window_bounds = array<i64: 1, 1>}, {pipeline_mode = #tpu.pipeline_mode<synchronous>, transform_indices = @transform_7, window_bounds = array<i64: 31, 1>}, {transform_indices = @transform_8, window_bounds = array<i64: 1, 1, 256>}, {transform_indices = @transform_9, window_bounds = array<i64: 1, 31, 256>}]} {
    %c0 = arith.constant 0 : index
    %c0_0 = arith.constant 0 : index
    %c0_1 = arith.constant 0 : index
    %0 = vector.load %arg2[%c0, %c0_0, %c0_1] : memref<1x4x256xf32, #tpu.memory_space<vmem>>, vector<1x4x256xf32>
    %1 = vector.shape_cast %0 : vector<1x4x256xf32> to vector<4x256xf32>
    %c0_2 = arith.constant 0 : index
    %c0_3 = arith.constant 0 : index
    %2 = vector.load %arg4[%c0_2, %c0_3] : memref<1x4xf32, #tpu.memory_space<vmem>>, vector<1x4xf32>
    %cst = arith.constant dense<0.000000e+00> : vector<1x256xf32>
    %3 = tpu.matmul %2, %1, %cst {dimension_numbers = #tpu.dot_dimension_numbers<[1], [0], [0], [1], [0, 0, 1, 1], [], []>} : vector<1x4xf32>, vector<4x256xf32>, vector<1x256xf32> -> vector<1x256xf32>
    %c0_4 = arith.constant 0 : index
    %c0_5 = arith.constant 0 : index
    %4 = vector.load %arg6[%c0_4, %c0_5] : memref<31x4xf32, #tpu.memory_space<vmem>>, vector<31x4xf32>
    %cst_6 = arith.constant dense<0.000000e+00> : vector<31x256xf32>
    %5 = tpu.matmul %4, %1, %cst_6 {dimension_numbers = #tpu.dot_dimension_numbers<[1], [0], [0], [1], [0, 0, 1, 1], [], []>} : vector<31x4xf32>, vector<4x256xf32>, vector<31x256xf32> -> vector<31x256xf32>
    %c0_7 = arith.constant 0 : index
    %c0_8 = arith.constant 0 : index
    %c0_9 = arith.constant 0 : index
    %6 = vector.load %arg3[%c0_7, %c0_8, %c0_9] : memref<1x4x256xf32, #tpu.memory_space<vmem>>, vector<1x4x256xf32>
    %7 = vector.shape_cast %6 : vector<1x4x256xf32> to vector<4x256xf32>
    %c0_10 = arith.constant 0 : index
    %c0_11 = arith.constant 0 : index
    %8 = vector.load %arg5[%c0_10, %c0_11] : memref<1x4xf32, #tpu.memory_space<vmem>>, vector<1x4xf32>
    %cst_12 = arith.constant dense<0.000000e+00> : vector<1x256xf32>
    %9 = tpu.matmul %8, %7, %cst_12 {dimension_numbers = #tpu.dot_dimension_numbers<[1], [0], [0], [1], [0, 0, 1, 1], [], []>} : vector<1x4xf32>, vector<4x256xf32>, vector<1x256xf32> -> vector<1x256xf32>
    %10 = arith.addf %3, %9 : vector<1x256xf32>
    %c0_13 = arith.constant 0 : index
    %c0_14 = arith.constant 0 : index
    %11 = vector.load %arg7[%c0_13, %c0_14] : memref<31x4xf32, #tpu.memory_space<vmem>>, vector<31x4xf32>
    %cst_15 = arith.constant dense<0.000000e+00> : vector<31x256xf32>
    %12 = tpu.matmul %11, %7, %cst_15 {dimension_numbers = #tpu.dot_dimension_numbers<[1], [0], [0], [1], [0, 0, 1, 1], [], []>} : vector<31x4xf32>, vector<4x256xf32>, vector<31x256xf32> -> vector<31x256xf32>
    %13 = arith.addf %5, %12 : vector<31x256xf32>
    %c0_16 = arith.constant 0 : index
    %c0_17 = arith.constant 0 : index
    %14 = vector.load %arg8[%c0_16, %c0_17] : memref<1x1xf32, #tpu.memory_space<vmem>>, vector<1x1xf32>
    %15 = vector.broadcast %14 : vector<1x1xf32> to vector<1x256xf32>
    %16 = arith.addf %10, %15 : vector<1x256xf32>
    %c0_18 = arith.constant 0 : index
    %c0_19 = arith.constant 0 : index
    %c0_20 = arith.constant 0 : index
    %17 = vector.load %arg10[%c0_18, %c0_19, %c0_20] : memref<1x1x256xf32, #tpu.memory_space<vmem>>, vector<1x1x256xf32>
    %18 = vector.shape_cast %17 : vector<1x1x256xf32> to vector<1x256xf32>
    %19 = vector.shape_cast %16 : vector<1x256xf32> to vector<1x1x256xf32>
    tpu.vector_store %arg10[%c0_18, %c0_19, %c0_20], %19 {strides = array<i32>} : memref<1x1x256xf32, #tpu.memory_space<vmem>>, vector<1x1x256xf32>,
    %c0_21 = arith.constant 0 : index
    %c0_22 = arith.constant 0 : index
    %20 = vector.load %arg9[%c0_21, %c0_22] : memref<31x1xf32, #tpu.memory_space<vmem>>, vector<31x1xf32>
    %21 = vector.broadcast %20 : vector<31x1xf32> to vector<31x256xf32>
    %22 = arith.addf %13, %21 : vector<31x256xf32>
    %c0_23 = arith.constant 0 : index
    %c0_24 = arith.constant 0 : index
    %c0_25 = arith.constant 0 : index
    %23 = vector.load %arg11[%c0_23, %c0_24, %c0_25] : memref<1x31x256xf32, #tpu.memory_space<vmem>>, vector<1x31x256xf32>
    %24 = vector.shape_cast %23 : vector<1x31x256xf32> to vector<31x256xf32>
    %25 = vector.shape_cast %22 : vector<31x256xf32> to vector<1x31x256xf32>
    tpu.vector_store %arg11[%c0_23, %c0_24, %c0_25], %25 {strides = array<i32>} : memref<1x31x256xf32, #tpu.memory_space<vmem>>, vector<1x31x256xf32>,
    return
  }
  func.func @transform_0(%arg0: i32, %arg1: i32) -> (i32, i32, i32) {
    %c0_i32 = arith.constant 0 : i32
    %c0_i32_0 = arith.constant 0 : i32
    return %arg0, %c0_i32, %arg1 : i32, i32, i32
  }
  func.func @transform_1(%arg0: i32, %arg1: i32) -> (i32, i32, i32) {
    %c0_i32 = arith.constant 0 : i32
    %c0_i32_0 = arith.constant 0 : i32
    return %arg0, %c0_i32, %arg1 : i32, i32, i32
  }
  func.func @transform_2(%arg0: i32, %arg1: i32) -> (i32, i32) {
    %c0_i32 = arith.constant 0 : i32
    %c0_i32_0 = arith.constant 0 : i32
    %c0_i32_1 = arith.constant 0 : i32
    return %c0_i32, %c0_i32_0 : i32, i32
  }
  func.func @transform_3(%arg0: i32, %arg1: i32) -> (i32, i32) {
    %c0_i32 = arith.constant 0 : i32
    %c0_i32_0 = arith.constant 0 : i32
    %c0_i32_1 = arith.constant 0 : i32
    return %c0_i32, %c0_i32_0 : i32, i32
  }
  func.func @transform_4(%arg0: i32, %arg1: i32) -> (i32, i32) {
    %c0_i32 = arith.constant 0 : i32
    %c0_i32_0 = arith.constant 0 : i32
    %c0_i32_1 = arith.constant 0 : i32
    return %c0_i32, %c0_i32_0 : i32, i32
  }
  func.func @transform_5(%arg0: i32, %arg1: i32) -> (i32, i32) {
    %c0_i32 = arith.constant 0 : i32
    %c0_i32_0 = arith.constant 0 : i32
    %c0_i32_1 = arith.constant 0 : i32
    return %c0_i32, %c0_i32_0 : i32, i32
  }
  func.func @transform_6(%arg0: i32, %arg1: i32) -> (i32, i32) {
    %c0_i32 = arith.constant 0 : i32
    %c0_i32_0 = arith.constant 0 : i32
    %c0_i32_1 = arith.constant 0 : i32
    return %c0_i32, %c0_i32_0 : i32, i32
  }
  func.func @transform_7(%arg0: i32, %arg1: i32) -> (i32, i32) {
    %c0_i32 = arith.constant 0 : i32
    %c0_i32_0 = arith.constant 0 : i32
    %c0_i32_1 = arith.constant 0 : i32
    return %c0_i32, %c0_i32_0 : i32, i32
  }
  func.func @transform_8(%arg0: i32, %arg1: i32) -> (i32, i32, i32) {
    %c0_i32 = arith.constant 0 : i32
    %c0_i32_0 = arith.constant 0 : i32
    return %arg0, %c0_i32, %arg1 : i32, i32, i32
  }
  func.func @transform_9(%arg0: i32, %arg1: i32) -> (i32, i32, i32) {
    %c0_i32 = arith.constant 0 : i32
    %c0_i32_0 = arith.constant 0 : i32
    return %arg0, %c0_i32, %arg1 : i32, i32, i32
  }
}

</mosaic_0001>

<bundles_post_ra>
// kernel: tpu_custom_call.1
= control target key start
LH: loop header
LB: loop body
LE: loop exit
PB: predicated region body
PF: predicated region fallthrough
CT: control target
= control target key end

     0   :  { %s1342_s0 = inlined_call_operand.vmem [shape: f32[2,4,256], index: 0, kind: input, shape index: {}]   ;;  %s1343_s1 = inlined_call_operand.vmem [shape: f32[2,4,256], index: 1, kind: input, shape index: {}]   ;;  %s1344_s2 = inlined_call_operand.vmem [shape: f32[1,4], index: 2, kind: input, shape index: {}]   ;;  %s1345_s3 = inlined_call_operand.vmem [shape: f32[1,4], index: 3, kind: input, shape index: {}]   ;;  %s1346_s4 = inlined_call_operand.vmem [shape: f32[31,4], index: 4, kind: input, shape index: {}]   ;;  %s1347_s5 = inlined_call_operand.vmem [shape: f32[31,4], index: 5, kind: input, shape index: {}]   ;;  %s1348_s6 = inlined_call_operand.<no memory space> [shape: f32[1,1], index: 6, kind: input, shape index: {}]   ;;  %s1349_s7 = inlined_call_operand.vmem [shape: f32[31,1], index: 7, kind: input, shape index: {}]   ;;  %s1350_s8 = inlined_call_operand.hbm [shape: f32[2,1,256], index: 8, kind: output, shape index: {0}]   ;;  %s1351_s9 = inlined_call_operand.vmem [shape: f32[2,31,256], index: 9, kind: output, shape index: {1}]  }
   0x1   :  { %v15_v0 = vstv %s1348_s6 }
   0x2   :  { %16 = vst [vmem:[#allocation2] sm:$0x1] %v15_v0 }
   0x3   :  { %17 = vsyncpa [#allocation4], 0 }
   0x4   :  { %19 = vsyncpa [#allocation4 + $0x1], 0  ;;  %s1155_s11 = smov 0   ;;  %s1157_s12 = smov 0  }
   0x5   :  { %s1159_s13 = smov 0   ;;  %s1161_s14 = smov 0  }
   0x6   :  { %s1163_s15 = smov 0   ;;  %s1165_s16 = smov 0  }
   0x7 LB: > { %s915_s6 = sadd.s32 4294967295, %s1099_s16   ;;  %s916_s17 = sadd.s32 4294967294, %s1099_s16   ;;  %s1099_s16 = sphi %s1165_s16, %s25_s16   ;;  %s1095_s15 = sphi %s1163_s15, %s1358_s15   ;;  %s1091_s14 = sphi %s1161_s14, %s1357_s14   ;;  %s1087_s13 = sphi %s1159_s13, %s1356_s13   ;;  %s1083_s12 = sphi %s1157_s12, %s1355_s12   ;;  %s1079_s11 = sphi %s1155_s11, %s1354_s11  }
   0x8   : > { %s37_s18 = sadd.s32 1, %s1095_s15  ;;  %s228_s19 = sadd.s32 1, %s1087_s13 }
   0x9   : > { %p39_p0 = scmp.ge.s32.totalorder %s37_s18, 2  ;;  %p238_p1 = scmp.ne.s32.totalorder %s1087_s13, %s1083_s12 }
   0xa   : > { %p239_p2 = scmp.eq.s32.totalorder %s915_s6, 1  ;;  %p244_p3 = scmp.ne.s32.totalorder %s1083_s12, %s1079_s11 }
   0xb   : > { %s1360_s18 = smov (%p39_p0, %s37_s18), 0  ;;  %p245_p5 = scmp.eq.s32.totalorder %s916_s17, 1 }
   0xc   : > { %p1195_p4 = por %p239_p2, %p238_p1  ;;  %s223_s21 = ssub.s32 %s1095_s15, %s1360_s18 }
   0xd   : > { %p919_p6 = scmp.ge.s32.totalorder %s1099_s16, 1  ;;  %p226_p7 = scmp.eq.s32.totalorder %s223_s21, 0 }
   0xe   : > { %p1202_p8 = por %p245_p5, %p244_p3  ;;  %p335_p9 = scmp.lt.s32.totalorder %s1099_s16, 3 }
   0xf   : > { %s1208_s23 = scalar_select %p226_p7, %s1087_s13, %s228_s19  }
  0x10   : > { %p336_p10 = pnand %p919_p6, %p335_p9 }
  0x11   : > { %p394_p11 = scmp.lt.s32.totalorder (!%p336_p10), %s1091_s14, 1  ;;  %s379_s27 = sand.u32 (!%p336_p10), 1, %s1083_s12  }
  0x12   : > { %339 = sbr.rel (%p336_p10) target bundleno = 223 (0xdf), region = 52  ;;  %s920_s29 = sshll.u32 (!%p336_p10), %s379_s27, 1 }
  0x13   : > { %s381_s17 = scalar_lea.vmem (!%p336_p10), [#allocation3], %s920_s29  ;;  %s1041_s30 = scalar_lea.hbm (!%p336_p10), %s1350_s8, 4 }
  0x14   : > { %s778_s19 = sshll.u32 (!%p336_p10), %s381_s17, 4  ;;  %s779_s19 = int_to_ptr.vmem [resolvable:$true] %s778_s19 }
  0x17   : > { %s1212_s24 = scalar_select %p394_p11, %s1091_s14, 1  ;;  %v694_v2 = vld [vmem:[#allocation2] sm:$0x1]  ;;  %v1101_v3 = vmov 0   ;;  %vm440_vm0 = vcmask 1043456   ;;  %vm436_vm1 = vcmask 31744   ;;  %v709_v35 = vlaneseq }
  0x18   : > { %1018 = vset.pattern.permute.xlu0 %v1101_v3  ;;  %1019 = vset.pattern.permute.xlu1 %v1101_v3  ;;  %v431_v5 = vld [vmem:[%s1345_s3] sm:$0x1]  ;;  %v715_v15 = vld [vmem:[%s1349_s7 + $0x8] sm:$0xff]  ;;  %v717_v16 = vld [vmem:[%s1349_s7 + $0x18] sm:$0x7f]  ;;  %vm706_vm2 = vcmask 1040384  }
  0x19   : > { %s959_s25 = sshll.u32 %s1212_s24, 3  ;;  %697 = vperm.xlu0 %1018, %v694_v2   ;;  %1020 = vset.pattern.permute.xlu2 %v1101_v3  ;;  %v425_v8 = vld [vmem:[%s1344_s2] sm:$0x1]  ;;  %v537_v18 = vld [vmem:[%s1347_s5 + $0x8] sm:$0xff]  ;;  %v716_v21 = vld [vmem:[%s1349_s7 + $0x10] sm:$0xff]  ;;  %vm711_vm3 = vcmp.lt.s32.totalorder %v709_v35, 256 }
  0x1a   : > { %s411_s28 = scalar_lea.vmem %s1343_s1, %s959_s25  ;;  %s401_s10 = scalar_lea.vmem %s1342_s0, %s959_s25  ;;  %v714_v11 = vld [vmem:[%s1349_s7] sm:$0xff]  ;;  %725 = vperm.xlu1 %1019, %v715_v15   ;;  %735 = vperm.xlu2 %1020, %v717_v16   ;;  %v427_v22 = vld [vmem:[%s1346_s4 + $0x8] sm:$0xff]  ;;  %v538_v23 = vld [vmem:[%s1347_s5 + $0x10] sm:$0xff] }
  0x1b   : > { %v430_v1 = vld [vmem:[%s411_s28] sm:$0xff]  ;;  %v428_v24 = vld [vmem:[%s1346_s4 + $0x10] sm:$0xff]  ;;  %v539_v25 = vld [vmem:[%s1347_s5 + $0x18] sm:$0x7f]  ;;  %s956_s28 = sshll.u32 %s1091_s14, 1  ;;  %s755_s14 = scalar_lea.sflag [#allocation4], %s379_s27 }
  0x1c   : > { %433 = vst [vmem:[#allocation1] ss:$2 sm:$0xff] %v430_v1  ;;  %v424_v4 = vld [vmem:[%s401_s10] sm:$0xff]  ;;  %v429_v26 = vld [vmem:[%s1346_s4 + $0x18] sm:$0x7f]  ;;  %s776_s6 = scalar_lea.hbm %s1350_s8, %s956_s28 }
  0x1d   : > { %v536_v12 = vld [vmem:[%s1347_s5] sm:$0xff]  ;;  %s780_s21 = sshll.u32 %s776_s6, 4  ;;  %s781_s21 = int_to_ptr.hbm [resolvable:$true] %s780_s21 }
  0x1e   : > { %v426_v17 = vld [vmem:[%s1346_s4] sm:$0xff]  ;;  %s1035_s25 = sshra.s32 %s781_s21, 4  ;;  %s1036_s25 = int_to_ptr.hbm [resolvable:$true] %s1035_s25 }
  0x1f   : > { %s1037_s26 = scalar_lea.hbm %s1036_s25, 2  ;;  %p1042_p1 = scmp.lt.s32.totalorder %s1036_s25, %s1350_s8 }
  0x20   : > { %p1038_p12 = scmp.ne.s32.totalorder %s1036_s25, %s1037_s26  ;;  %p1043_p2 = scmp.lt.s32.totalorder %s1041_s30, %s1037_s26 }
  0x21   : > { %720 = vperm.xlu0 %1018, %v714_v11  }
  0x22   : > { %730 = vperm.xlu1 %1019, %v716_v21   ;;  %p1039_p13 = pnand %p1038_p12, %p1195_p4  ;;  %p1044_p3 = por %p1043_p2, %p1042_p1 }
  0x23   : > { %v434_v6 = vld.sshfl [vmem:[#allocation1] sm:$0xff pattern:$0x75316420]  ;;  %v435_v7 = vld.sshfl [vmem:[#allocation1 + $0x8] sm:$0xff pattern:$0x75316420] }
  0x24   : > { %486 = vst [vmem:[#allocation1] ss:$2 sm:$0xff] %v424_v4  ;;  %929 = vmatpush.msk.msra.mxu1 %vm440_vm0, %v435_v7  ;;  %927 = vmatpush.msk.msra.mxu0 %vm440_vm0, %v434_v6  ;;  %p1040_p0 = pneg %p1039_p13 }
  0x25   : > { %930 = vmatmul.msk.f32.vlgmr.msra.gmra.mxu1 %vm436_vm1, %v431_v5  ;;  %928 = vmatmul.msk.f32.vlgmr.msra.gmra.mxu0 %vm436_vm1, %v431_v5 }
  0x26   : > { %p1045_p5 = pnand %p1044_p3, %p1040_p0 }
  0x2b   : > { %v488_v9 = vld.sshfl [vmem:[#allocation1 + $0x8] sm:$0xff pattern:$0x75316420]  ;;  %v487_v10 = vld.sshfl [vmem:[#allocation1] sm:$0xff pattern:$0x75316420] }
  0x2c   : > { %933 = vmatpush.msk.msra.mxu3 %vm440_vm0, %v488_v9  ;;  %931 = vmatpush.msk.msra.mxu2 %vm440_vm0, %v487_v10  ;;  %540 = vst [vmem:[#allocation1] ss:$2 sm:$0xff] %v430_v1 }
  0x2d   : > { %934 = vmatmul.msk.f32.vlgmr.msra.gmra.mxu3 %vm436_vm1, %v425_v8  ;;  %932 = vmatmul.msk.f32.vlgmr.msra.gmra.mxu2 %vm436_vm1, %v425_v8 }
  0x33   : > { %v541_v13 = vld.sshfl [vmem:[#allocation1] sm:$0xff pattern:$0x75316420]  ;;  %v542_v14 = vld.sshfl [vmem:[#allocation1 + $0x8] sm:$0xff pattern:$0x75316420] }
  0x34   : > { %617 = vst [vmem:[#allocation1] ss:$2 sm:$0xff] %v424_v4  ;;  %935 = vmatpush.msk.msrb.mxu0 %vm440_vm0, %v541_v13  ;;  %940 = vmatpush.msk.msrb.mxu1 %vm440_vm0, %v542_v14 }
  0x35   : > { %936 = vmatmul.msk.f32.vlgmr.msrb.gmra.mxu0 %vm436_vm1, %v536_v12  ;;  %941 = vmatmul.msk.f32.vlgmr.msrb.gmra.mxu1 %vm436_vm1, %v536_v12 }
  0x3b   : > { %v618_v19 = vld.sshfl [vmem:[#allocation1] sm:$0xff pattern:$0x75316420]  ;;  %v619_v20 = vld.sshfl [vmem:[#allocation1 + $0x8] sm:$0xff pattern:$0x75316420] }
  0x3c   : > { %945 = vmatpush.msk.msrb.mxu2 %vm440_vm0, %v618_v19  ;;  %950 = vmatpush.msk.msrb.mxu3 %vm440_vm0, %v619_v20 }
  0x3d   : > { %946 = vmatmul.msk.f32.vlgmr.msrb.gmra.mxu2 %vm436_vm1, %v426_v17  ;;  %951 = vmatmul.msk.f32.vlgmr.msrb.gmra.mxu3 %vm436_vm1, %v426_v17 }
  0x3e   : > { %937 = vmatmul.msk.f32.gmra.mxu0 %vm436_vm1, %v537_v18  ;;  %942 = vmatmul.msk.f32.gmra.mxu1 %vm436_vm1, %v537_v18 }
  0x45   : > { %947 = vmatmul.msk.f32.gmra.mxu2 %vm436_vm1, %v427_v22  ;;  %952 = vmatmul.msk.f32.gmra.mxu3 %vm436_vm1, %v427_v22 }
  0x46   : > { %938 = vmatmul.msk.f32.gmra.mxu0 %vm436_vm1, %v538_v23  ;;  %943 = vmatmul.msk.f32.gmra.mxu1 %vm436_vm1, %v538_v23 }
  0x4d   : > { %948 = vmatmul.msk.f32.gmra.mxu2 %vm436_vm1, %v428_v24  ;;  %953 = vmatmul.msk.f32.gmra.mxu3 %vm436_vm1, %v428_v24 }
  0x4e   : > { %939 = vmatmul.msk.f32.gmra.mxu0 %vm436_vm1, %v539_v25  ;;  %944 = vmatmul.msk.f32.gmra.mxu1 %vm436_vm1, %v539_v25 }
  0x55   : > { %949 = vmatmul.msk.f32.gmra.mxu2 %vm436_vm1, %v429_v26  ;;  %954 = vmatmul.msk.f32.gmra.mxu3 %vm436_vm1, %v429_v26 }
  0x8b   : > { %v698_v27 = vpop.permute.xlu0 %697 }
  0x8c   : > { %v700_v30 = vperm.slane %v698_v27, 0 }
  0xa2   : > { %v482_v28 = vpop.f32.mrf.mxu1  ;;  %v462_v29 = vpop.f32.mrf.mxu0 }
  0xb0   : > { %v533_v31 = vpop.f32.mrf.mxu3  ;;  %v513_v32 = vpop.f32.mrf.mxu2 }
  0xb1   : > { %v534_v33 = vadd.f32 %v533_v31, %v482_v28  ;;  %v514_v34 = vadd.f32 %v513_v32, %v462_v29 }
  0xb2   : > { %v576_v40 = vpop.f32.mrf.mxu0  ;;  %v605_v41 = vpop.f32.mrf.mxu1 }
  0xb3   : > { %v702_v36 = vadd.f32 %v700_v30, %v534_v33  ;;  %v701_v37 = vadd.f32 %v700_v30, %v514_v34 }
  0xb5   : > { %v705_v38 = vrot.slane %v702_v36, 7 }
  0xb7   : > { %v707_v39 = vsel %vm706_vm2, %v701_v37, %v705_v38 }
  0xb8   : > { %713 = vst.msk [vmem:[%s381_s17] sm:$0x3] %vm711_vm3, %v707_v39 }
  0xb9   : > { %1048 = shalt.err (!%p1045_p5)
}
  0xba   : > { %962 = dma.vmem_to_hbm [thread:$0]  (%p1195_p4), %s779_s19, 32, %s781_s21, %s755_s14   ;;  %v721_v42 = vpop.permute.xlu0 %720  ;;  %v726_v51 = vpop.permute.xlu1 %725 }
  0xbb   : > { %s961_s27 = sshll.u32 %s1212_s24, 6  ;;  %v579_v47 = vpop.f32.mrf.mxu0  ;;  %v608_v48 = vpop.f32.mrf.mxu1 }
  0xbc   : > { %s1310_s29 = scalar_lea.vmem %s1351_s9, %s961_s27  ;;  %v736_v5 = vpop.permute.xlu2 %735 }
  0xc0   : > { %v653_v43 = vpop.f32.mrf.mxu2  ;;  %v682_v44 = vpop.f32.mrf.mxu3 }
  0xc1   : > { %v654_v45 = vadd.f32 %v653_v43, %v576_v40  ;;  %v683_v46 = vadd.f32 %v682_v44, %v605_v41 }
  0xc2   : > { %v731_v60 = vpop.permute.xlu1 %730 }
  0xc3   : > { %v738_v49 = vadd.f32 %v721_v42, %v654_v45  ;;  %v739_v50 = vadd.f32 %v721_v42, %v683_v46  ;;  %v582_v58 = vpop.f32.mrf.mxu0  ;;  %v611_v59 = vpop.f32.mrf.mxu1 }
  0xc5   : > { %746 = vst [vmem:[%s1310_s29] sm:$0xff] %v738_v49 }
  0xc6   : > { %747 = vst [vmem:[%s1310_s29 + $0x8] sm:$0xff] %v739_v50 }
  0xc8   : > { %v656_v52 = vpop.f32.mrf.mxu2  ;;  %v685_v53 = vpop.f32.mrf.mxu3 }
  0xc9   : > { %v657_v54 = vadd.f32 %v656_v52, %v579_v47  ;;  %v686_v55 = vadd.f32 %v685_v53, %v608_v48 }
  0xcb   : > { %v740_v56 = vadd.f32 %v726_v51, %v657_v54  ;;  %v741_v57 = vadd.f32 %v726_v51, %v686_v55  ;;  %v585_v3 = vpop.f32.mrf.mxu0  ;;  %v614_v4 = vpop.f32.mrf.mxu1 }
  0xcd   : > { %748 = vst [vmem:[%s1310_s29 + $0x10] sm:$0xff] %v740_v56 }
  0xce   : > { %749 = vst [vmem:[%s1310_s29 + $0x18] sm:$0xff] %v741_v57 }
  0xd0   : > { %v659_v61 = vpop.f32.mrf.mxu2  ;;  %v688_v62 = vpop.f32.mrf.mxu3 }
  0xd1   : > { %v660_v63 = vadd.f32 %v659_v61, %v582_v58  ;;  %v689_v0 = vadd.f32 %v688_v62, %v611_v59 }
  0xd3   : > { %v742_v1 = vadd.f32 %v731_v60, %v660_v63  ;;  %v743_v2 = vadd.f32 %v731_v60, %v689_v0 }
  0xd5   : > { %750 = vst [vmem:[%s1310_s29 + $0x20] sm:$0xff] %v742_v1 }
  0xd6   : > { %751 = vst [vmem:[%s1310_s29 + $0x28] sm:$0xff] %v743_v2 }
  0xd8   : > { %v662_v6 = vpop.f32.mrf.mxu2  ;;  %v691_v7 = vpop.f32.mrf.mxu3 }
  0xd9   : > { %v663_v8 = vadd.f32 %v662_v6, %v585_v3  ;;  %v692_v9 = vadd.f32 %v691_v7, %v614_v4 }
  0xdb   : > { %v744_v10 = vadd.f32 %v736_v5, %v663_v8  ;;  %v745_v11 = vadd.f32 %v736_v5, %v692_v9 }
  0xdd   : > { %752 = vst [vmem:[%s1310_s29 + $0x30] sm:$0x7f] %v744_v10 }
  0xde   : > { %753 = vst [vmem:[%s1310_s29 + $0x38] sm:$0x7f] %v745_v11 }
  0xdf PF: > { %p968_p4 = scmp.ge.s32.totalorder %s1099_s16, 2  ;;  %s796_s20 = sand.u32 1, %s1079_s11  }
  0xe0   : > { %s797_s24 = scalar_lea.sflag [#allocation4], %s796_s20 }
  0xe1   : > { %p965_p6 = pnand %p968_p4, %p1202_p8 }
  0xe3   : > { %p966_p7 = pneg %p965_p6 }
  0xe5   : > { %1074 = dma.done.wait (%p966_p7), %s797_s24, 32  }
  0xe6   : > { %1076 = vsyncadd (%p966_p7), %s797_s24, 4294967264  ;;  %s25_s16 = sadd.s32 1, %s1099_s16   ;;  %s1354_s11 = smov %s1083_s12 }
  0xe7   : > { %p22_p9 = scmp.ge.s32.totalorder %s25_s16, 4   ;;  %s1355_s12 = smov %s1087_s13 }
  0xe8   : > { %s1356_s13 = smov %s1208_s23  ;;  %s1357_s14 = smov %s1095_s15 }
  0xe9   : > { %s1358_s15 = smov %s1360_s18  ;;  %24 = sbr.rel (!%p22_p9) target bundleno = 7 (0x7), region = 102 }
  0xee   :  { %815 = vsyncpa [#allocation4], 1 }
  0xef   :  { %817 = vsyncpa [#allocation4 + $0x1], 1 }

</bundles_post_ra>
